<compile_context>
chip_gen: v7x
topology: tpu7x:2x2x1
jax: 0.10.0
libtpu: 0.0.40
codegen_flags: <defaults>
</compile_context>

<pallas_src>
import functools
import math

import jax
import jax.numpy as jnp
from jax.experimental import pallas as pl
from jax.experimental.pallas import tpu as pltpu


def _sine_encoding_kernel(e_ref, consts_ref, wblk_ref, o_ref, *, k_e):
    """One grid step over R packed rows (= R * G eigenvalues).

    e_ref      : (R, K)      cols 0..G-1 = eigenvalues, col G = 1.0, rest 0
    consts_ref : (2K+2, 128) rows [0,K)=SEL, [K,2K)=W2, 2K=scale, 2K+1=phase
    wblk_ref   : (128, 128)  block-diagonal, G copies of W[:, 1:]^T
    o_ref      : (R, 128)    packed output rows (row-major == (R*G, H))
    """
    c = consts_ref[...]
    sel = c[0:k_e, :]                         # (K, 128)
    w2 = c[k_e:2 * k_e, :]                    # (K, 128)
    scale = c[2 * k_e:2 * k_e + 1, :]         # (1, 128)
    phase = c[2 * k_e + 1:2 * k_e + 2, :]     # (1, 128)

    eg = e_ref[...]                           # (R, K)

    # MXU broadcast: each eigenvalue replicated across its H output lanes.
    # SEL is a 0/1 selector so this is numerically exact.
    e_b = jnp.dot(eg, sel, preferred_element_type=jnp.float32)          # (R,128)

    # Single fused transcendental pass; cos(x) = sin(x + pi/2).
    feat = jnp.sin(e_b * scale + phase)                                 # (R,128)

    # Main Linear on the MXU.  The raw-eigenvalue column and the bias are
    # folded into the second (tiny-K) matmul via the ones column of e_grp,
    # so there is no VPU epilogue at all.
    out = (jnp.dot(feat, wblk_ref[...], preferred_element_type=jnp.float32)
           + jnp.dot(eg, w2, preferred_element_type=jnp.float32))       # (R,128)

    o_ref[...] = out.astype(o_ref.dtype)


@functools.partial(jax.jit, static_argnames=("hidden_dim", "tile_n", "out_dtype"))
def sine_encoding(e, weight, bias, *, hidden_dim=32, tile_n=8192,
                  out_dtype=jnp.float32):
    """e: (N,) float32. weight: (H, H+1) (PyTorch Linear layout). bias: (H,)."""
    N = e.shape[0]
    H = hidden_dim
    assert H % 2 == 0, "hidden_dim must be even (sin/cos split)"
    assert 128 % H == 0, "kernel packs 128 // hidden_dim eigenvalues per lane row"
    H2 = H // 2
    G = 128 // H                          # eigenvalues per packed output row
    K_E = ((G + 1 + 7) // 8) * 8          # e-group width (G eigs + ones col, padded)

    # ---- tiling: tile_n eigenvalues per grid step -------------------------
    N_g = ((N + G - 1) // G) * G          # eigenvalues rounded to a full packed row
    step = 16 * G                         # packed-row tile stays a multiple of 16
                                          # (safe for both f32 and bf16 outputs)
    cap = max(step, ((N_g // 2) // step) * step)   # >= 2 grid steps when possible
    tn = max(step, (min(tile_n, cap) // step) * step)
    r_tile = tn // G                      # packed output rows per grid step
    rows_out = N_g // G                   # packed rows in the real output
    grid = pl.cdiv(rows_out, r_tile)
    n_total = grid * tn                   # eigenvalues covered (incl. grid padding)

    # ---- inputs ------------------------------------------------------------
    e_pad = jnp.pad(e.astype(jnp.float32), (0, n_total - N))
    rows_in = n_total // G
    e_grp = jnp.concatenate(
        [e_pad.reshape(rows_in, G),
         jnp.ones((rows_in, 1), jnp.float32),                   # bias (ones) column
         jnp.zeros((rows_in, K_E - G - 1), jnp.float32)],
        axis=1)                                                 # (rows_in, K_E)

    # ---- constants ---------------------------------------------------------
    div = jnp.exp(jnp.arange(0, H, 2, dtype=jnp.float32)
                  * (-math.log(10000.0) / H))                   # (H/2,)
    scale1 = jnp.concatenate([100.0 * div, 100.0 * div])        # (H,)
    phase1 = jnp.concatenate([jnp.zeros((H2,), jnp.float32),
                              jnp.full((H2,), math.pi / 2.0, jnp.float32)])
    scale_row = jnp.tile(scale1, G).reshape(1, 128)
    phase_row = jnp.tile(phase1, G).reshape(1, 128)

    w = weight.astype(jnp.float32)                              # (H, H+1)
    b = bias.astype(jnp.float32)                                # (H,)
    w_sc_t = w[:, 1:].T                                         # (H, H): [h,o]=W[o,1+h]
    wblk = jnp.kron(jnp.eye(G, dtype=jnp.float32), w_sc_t)      # (128, 128)

    sel_g = jnp.kron(jnp.eye(G, dtype=jnp.float32),
                     jnp.ones((1, H), jnp.float32))             # (G, 128)
    sel = jnp.concatenate(
        [sel_g, jnp.zeros((K_E - G, 128), jnp.float32)], axis=0)        # (K_E, 128)
    we_row = jnp.tile(w[:, 0], G).reshape(1, 128)               # raw-e weights per lane
    b_row = jnp.tile(b, G).reshape(1, 128)                      # bias per lane
    w2 = jnp.concatenate(
        [sel_g * we_row,                                        # rows 0..G-1: raw-e term
         b_row,                                                 # row G: bias (x ones col)
         jnp.zeros((K_E - G - 1, 128), jnp.float32)], axis=0)   # (K_E, 128)

    consts = jnp.concatenate([sel, w2, scale_row, phase_row], axis=0)   # (2K+2, 128)

    itemsize = jnp.dtype(out_dtype).itemsize
    cost = pl.CostEstimate(
        flops=2 * rows_in * 128 * (128 + 2 * K_E),
        transcendentals=rows_in * 128,
        bytes_accessed=(4 * rows_in * K_E
                        + itemsize * rows_out * 128
                        + 4 * (128 + 2 * K_E + 2) * 128),
    )

    kernel = functools.partial(_sine_encoding_kernel, k_e=K_E)
    out_packed = pl.pallas_call(
        kernel,
        out_shape=jax.ShapeDtypeStruct((rows_out, 128), out_dtype),
        grid_spec=pltpu.PrefetchScalarGridSpec(
            num_scalar_prefetch=0,
            grid=(grid,),
            in_specs=[
                pl.BlockSpec((r_tile, K_E), lambda i: (i, 0)),        # packed e groups
                pl.BlockSpec((2 * K_E + 2, 128), lambda i: (0, 0)),   # SEL|W2|scale|phase
                pl.BlockSpec((128, 128), lambda i: (0, 0)),           # block-diag weight
            ],
            out_specs=pl.BlockSpec((r_tile, 128), lambda i: (i, 0)),
        ),
        compiler_params=pltpu.CompilerParams(
            dimension_semantics=("parallel",)),
        cost_estimate=cost,
    )(e_grp, consts, wblk)

    # Row-major (rows_out, 128) bytes == (N_g, H): the reshape is layout
    # metadata only (no extra HBM pass, unlike the old transpose).
    out = out_packed.reshape(N_g, H)
    if N_g != N:
        # Only when N % G != 0: a contiguous prefix slice of the tail pad.
        out = out[:N]
    return out


def _reference(e, weight, bias, hidden_dim=32):
    """Pure-JAX reference matching the PyTorch forward exactly."""
    ee = e * 100.0
    div = jnp.exp(jnp.arange(0, hidden_dim, 2, dtype=jnp.float32)
                  * (-math.log(10000.0) / hidden_dim))
    pe = ee[:, None] * div
    eeig = jnp.concatenate([e[:, None], jnp.sin(pe), jnp.cos(pe)], axis=1)
    return eeig @ weight.T + bias


if __name__ == "__main__":
    hidden_dim = 32
    N = 200  # not a multiple of the tile -> exercises the boundary-masked path

    key = jax.random.PRNGKey(0)
    k_e, k_w, k_b = jax.random.split(key, 3)

    # Deterministic synthetic parameters (nn.Linear(H+1, H) shapes).
    bound = 1.0 / math.sqrt(hidden_dim + 1)
    weight = jax.random.uniform(k_w, (hidden_dim, hidden_dim + 1),
                                dtype=jnp.float32, minval=-bound, maxval=bound)
    bias = jax.random.uniform(k_b, (hidden_dim,), dtype=jnp.float32,
                              minval=-bound, maxval=bound)
    # Eigenvalue-like input (small positive values).
    e = jax.random.uniform(k_e, (N,), dtype=jnp.float32, minval=0.0, maxval=0.05)

    ref = _reference(e, weight, bias, hidden_dim=hidden_dim)

    # f32 output (default): matches the PyTorch module numerics.
    out = jax.block_until_ready(
        sine_encoding(e, weight, bias, hidden_dim=hidden_dim))
    assert out.shape == (N, hidden_dim)
    assert out.dtype == jnp.float32
    assert jnp.allclose(out, ref, atol=1e-4, rtol=1e-4), "f32 mismatch vs reference"

    # bf16 output variant: halves the dominant HBM write traffic (opt-in;
    # needs downstream numerical sign-off, so it is not the default).
    out_bf16 = jax.block_until_ready(
        sine_encoding(e, weight, bias, hidden_dim=hidden_dim,
                      out_dtype=jnp.bfloat16))
    assert out_bf16.shape == (N, hidden_dim)
    assert out_bf16.dtype == jnp.bfloat16
    assert jnp.allclose(out_bf16.astype(jnp.float32), ref,
                        atol=1e-2, rtol=1e-2), "bf16 mismatch vs reference"

    print("KERNEL_OK")
</pallas_src>

<mosaic_0001>
module attributes {stable_mosaic.version = 11 : i64} {
  func.func @_sine_encoding_kernel(%arg0: i32, %arg1: memref<16x8xf32, #tpu.memory_space<vmem>>, %arg2: memref<18x128xf32, #tpu.memory_space<vmem>>, %arg3: memref<128x128xf32, #tpu.memory_space<vmem>>, %arg4: memref<16x128xf32, #tpu.memory_space<vmem>>) attributes {dimension_semantics = [#tpu.dimension_semantics<parallel>], iteration_bounds = array<i64: 4>, scalar_prefetch = 0 : i64, scratch_operands = 0 : i64, tpu.core_type = #tpu.core_type<tc>, window_params = [{transform_indices = @transform_0, window_bounds = array<i64: 16, 8>}, {pipeline_mode = #tpu.pipeline_mode<synchronous>, transform_indices = @transform_1, window_bounds = array<i64: 18, 128>}, {pipeline_mode = #tpu.pipeline_mode<synchronous>, transform_indices = @transform_2, window_bounds = array<i64: 128, 128>}, {transform_indices = @transform_3, window_bounds = array<i64: 16, 128>}]} {
    %c0 = arith.constant 0 : index
    %c0_0 = arith.constant 0 : index
    %0 = vector.load %arg2[%c0, %c0_0] : memref<18x128xf32, #tpu.memory_space<vmem>>, vector<18x128xf32>
    %1 = vector.extract_strided_slice %0 {offsets = [0, 0], sizes = [8, 128], strides = [1, 1]} : vector<18x128xf32> to vector<8x128xf32>
    %2 = vector.extract_strided_slice %0 {offsets = [8, 0], sizes = [8, 128], strides = [1, 1]} : vector<18x128xf32> to vector<8x128xf32>
    %3 = vector.extract_strided_slice %0 {offsets = [16, 0], sizes = [1, 128], strides = [1, 1]} : vector<18x128xf32> to vector<1x128xf32>
    %4 = vector.extract_strided_slice %0 {offsets = [17, 0], sizes = [1, 128], strides = [1, 1]} : vector<18x128xf32> to vector<1x128xf32>
    %c0_1 = arith.constant 0 : index
    %c0_2 = arith.constant 0 : index
    %5 = vector.load %arg1[%c0_1, %c0_2] : memref<16x8xf32, #tpu.memory_space<vmem>>, vector<16x8xf32>
    %cst = arith.constant dense<0.000000e+00> : vector<16x128xf32>
    %6 = tpu.matmul %5, %1, %cst {dimension_numbers = #tpu.dot_dimension_numbers<[1], [0], [0], [1], [0, 0, 1, 1], [], []>} : vector<16x8xf32>, vector<8x128xf32>, vector<16x128xf32> -> vector<16x128xf32>
    %7 = vector.broadcast %3 : vector<1x128xf32> to vector<16x128xf32>
    %8 = arith.mulf %6, %7 : vector<16x128xf32>
    %9 = vector.broadcast %4 : vector<1x128xf32> to vector<16x128xf32>
    %10 = arith.addf %8, %9 : vector<16x128xf32>
    %11 = math.sin %10 : vector<16x128xf32>
    %c0_3 = arith.constant 0 : index
    %c0_4 = arith.constant 0 : index
    %12 = vector.load %arg3[%c0_3, %c0_4] : memref<128x128xf32, #tpu.memory_space<vmem>>, vector<128x128xf32>
    %cst_5 = arith.constant dense<0.000000e+00> : vector<16x128xf32>
    %13 = tpu.matmul %11, %12, %cst_5 {dimension_numbers = #tpu.dot_dimension_numbers<[1], [0], [0], [1], [0, 0, 1, 1], [], []>} : vector<16x128xf32>, vector<128x128xf32>, vector<16x128xf32> -> vector<16x128xf32>
    %cst_6 = arith.constant dense<0.000000e+00> : vector<16x128xf32>
    %14 = tpu.matmul %5, %2, %cst_6 {dimension_numbers = #tpu.dot_dimension_numbers<[1], [0], [0], [1], [0, 0, 1, 1], [], []>} : vector<16x8xf32>, vector<8x128xf32>, vector<16x128xf32> -> vector<16x128xf32>
    %15 = arith.addf %13, %14 : vector<16x128xf32>
    %c0_7 = arith.constant 0 : index
    %c0_8 = arith.constant 0 : index
    %16 = vector.load %arg4[%c0_7, %c0_8] : memref<16x128xf32, #tpu.memory_space<vmem>>, vector<16x128xf32>
    tpu.vector_store %arg4[%c0_7, %c0_8], %15 {strides = array<i32>} : memref<16x128xf32, #tpu.memory_space<vmem>>, vector<16x128xf32>,
    return
  }
  func.func @transform_0(%arg0: i32) -> (i32, i32) {
    %c0_i32 = arith.constant 0 : i32
    %c0_i32_0 = arith.constant 0 : i32
    return %arg0, %c0_i32 : i32, i32
  }
  func.func @transform_1(%arg0: i32) -> (i32, i32) {
    %c0_i32 = arith.constant 0 : i32
    %c0_i32_0 = arith.constant 0 : i32
    %c0_i32_1 = arith.constant 0 : i32
    return %c0_i32, %c0_i32_0 : i32, i32
  }
  func.func @transform_2(%arg0: i32) -> (i32, i32) {
    %c0_i32 = arith.constant 0 : i32
    %c0_i32_0 = arith.constant 0 : i32
    %c0_i32_1 = arith.constant 0 : i32
    return %c0_i32, %c0_i32_0 : i32, i32
  }
  func.func @transform_3(%arg0: i32) -> (i32, i32) {
    %c0_i32 = arith.constant 0 : i32
    %c0_i32_0 = arith.constant 0 : i32
    return %arg0, %c0_i32 : i32, i32
  }
}

</mosaic_0001>

<bundles_post_ra>
// kernel: tile.29
= control target key start
LH: loop header
LB: loop body
LE: loop exit
PB: predicated region body
PF: predicated region fallthrough
CT: control target
= control target key end

     0   :  { %s22_s0 = inlined_call_operand.vmem [shape: f32[32], index: 0, kind: input, shape index: {}]   ;;  %s23_s1 = inlined_call_operand.vmem [shape: f32[4,32], index: 1, kind: output, shape index: {}]  }
   0x1   :  { %v4_v0 = vld [vmem:[%s22_s0] ss:$0 sm:$0xff] }
   0x2   :  { %5 = vst [vmem:[%s23_s1] sm:$0xf] %v4_v0 }

// kernel: mul.41
= control target key start
LH: loop header
LB: loop body
LE: loop exit
PB: predicated region body
PF: predicated region fallthrough
CT: control target
= control target key end

     0   :  { %vm7_vm0 = vcmask 261120   ;;  %s37_s8 = smov 32   ;;  %s38_s9 = smov 64   ;;  %vm13_vm1 = vcmask 1048320   ;;  %vm19_vm2 = vcmask 785920   ;;  %vm25_vm3 = vcmask 523520   ;;  %s55_s0 = inlined_call_operand.vmem [shape: f32[4,32], index: 0, kind: input, shape index: {}]   ;;  %s56_s1 = inlined_call_operand.vmem [shape: f32[128], index: 1, kind: output, shape index: {}]  }
   0x1   :  { %v4_v0 = vld [vmem:[%s55_s0] sm:$0xf]  ;;  %s36_s0 = smov 96  }
   0x2   :  { %5 = vst [vmem:[#allocation1] sm:$0xf] %v4_v0 }
   0x9   :  { %v10_v1 = vld [vmem:[#allocation1 + $0x3] sm:$0x1]   ;;  %v22_v2 = vld [vmem:[#allocation1 + $0x1] sm:$0x1]   ;;  %v6_v3 = vld [vmem:[#allocation1] sm:$0x1]  }
   0xa   :  { %11 = vrot.lane.b32.xlu0 %v10_v1, %s36_s0  ;;  %23 = vrot.lane.b32.xlu1 %v22_v2, %s37_s8  ;;  %v16_v4 = vld [vmem:[#allocation1 + $0x2] sm:$0x1]   ;;  %8 = vst.msk [vmem:[#allocation0] sm:$0x1] %vm7_vm0, %v6_v3  }
   0xe   :  { %17 = vrot.lane.b32.xlu0 %v16_v4, %s38_s9 }
  0x7c   :  { %v12_v5 = vpop.permute.xlu0 %11   ;;  %v24_v6 = vpop.permute.xlu1 %23  }
  0x7d   :  { %14 = vst.msk [vmem:[#allocation0] sm:$0x1] %vm13_vm1, %v12_v5  }
  0x80   :  { %v18_v7 = vpop.permute.xlu0 %17  }
  0x81   :  { %20 = vst.msk [vmem:[#allocation0] sm:$0x1] %vm19_vm2, %v18_v7  }
  0x82   :  { %26 = vst.msk [vmem:[#allocation0] sm:$0x1] %vm25_vm3, %v24_v6  }
  0x89   :  { %v30_v8 = vld [vmem:[#allocation0] sm:$0x1] }
  0x8a   :  { %32 = vst [vmem:[%s56_s1] sm:$0x1] %v30_v8 }

// kernel: tile.22
= control target key start
LH: loop header
LB: loop body
LE: loop exit
PB: predicated region body
PF: predicated region fallthrough
CT: control target
= control target key end

     0   :  { %vm7_vm0 = vcmask 261120   ;;  %s37_s8 = smov 32   ;;  %s38_s9 = smov 64   ;;  %vm13_vm1 = vcmask 1048320   ;;  %vm19_vm2 = vcmask 785920   ;;  %vm25_vm3 = vcmask 523520   ;;  %s55_s0 = inlined_call_operand.vmem [shape: f32[4,32], index: 0, kind: input, shape index: {}]   ;;  %s56_s1 = inlined_call_operand.vmem [shape: f32[1,128], index: 1, kind: output, shape index: {}]  }
   0x1   :  { %v4_v0 = vld [vmem:[%s55_s0] sm:$0xf]  ;;  %s36_s0 = smov 96  }
   0x2   :  { %5 = vst [vmem:[#allocation1] sm:$0xf] %v4_v0 }
   0x9   :  { %v10_v1 = vld [vmem:[#allocation1 + $0x3] sm:$0x1]   ;;  %v22_v2 = vld [vmem:[#allocation1 + $0x1] sm:$0x1]   ;;  %v6_v3 = vld [vmem:[#allocation1] sm:$0x1]  }
   0xa   :  { %11 = vrot.lane.b32.xlu0 %v10_v1, %s36_s0  ;;  %23 = vrot.lane.b32.xlu1 %v22_v2, %s37_s8  ;;  %v16_v4 = vld [vmem:[#allocation1 + $0x2] sm:$0x1]   ;;  %8 = vst.msk [vmem:[#allocation0] sm:$0x1] %vm7_vm0, %v6_v3  }
   0xe   :  { %17 = vrot.lane.b32.xlu0 %v16_v4, %s38_s9 }
  0x7c   :  { %v12_v5 = vpop.permute.xlu0 %11   ;;  %v24_v6 = vpop.permute.xlu1 %23  }
  0x7d   :  { %14 = vst.msk [vmem:[#allocation0] sm:$0x1] %vm13_vm1, %v12_v5  }
  0x80   :  { %v18_v7 = vpop.permute.xlu0 %17  }
  0x81   :  { %20 = vst.msk [vmem:[#allocation0] sm:$0x1] %vm19_vm2, %v18_v7  }
  0x82   :  { %26 = vst.msk [vmem:[#allocation0] sm:$0x1] %vm25_vm3, %v24_v6  }
  0x89   :  { %v30_v8 = vld [vmem:[#allocation0] sm:$0x1] }
  0x8a   :  { %32 = vst [vmem:[%s56_s1] sm:$0x1] %v30_v8 }

// kernel: sine_encoding.1
= control target key start
LH: loop header
LB: loop body
LE: loop exit
PB: predicated region body
PF: predicated region fallthrough
CT: control target
= control target key end

     0   :  { %s1232_s12 = smov 0   ;;  %s1234_s13 = smov 0   ;;  %s1454_s0 = inlined_call_operand.vmem [shape: f32[64,8], index: 0, kind: input, shape index: {}]   ;;  %s1455_s1 = inlined_call_operand.vmem [shape: f32[18,128], index: 1, kind: input, shape index: {}]   ;;  %s1456_s2 = inlined_call_operand.vmem [shape: f32[128,128], index: 2, kind: input, shape index: {}]   ;;  %s1457_s3 = inlined_call_operand.vmem [shape: f32[50,128], index: 3, kind: output, shape index: {}]  }
   0x1   :  { %s1236_s14 = smov 0  }
   0x2 LB: > { %s1245_s15 = sadd.s32 4294967295, %s1172_s14   ;;  %s1247_s16 = sadd.s32 1, %s1172_s14   ;;  %s1172_s14 = sphi %s1236_s14, %s1461_s14   ;;  %s1168_s13 = sphi %s1234_s13, %s1460_s13   ;;  %s1164_s12 = sphi %s1232_s12, %s1459_s12  }
   0x3   : > { %s85_s17 = ssub.s32 %s1172_s14, %s1247_s16  ;;  %s88_s18 = sadd.s32 1, %s1168_s13 }
   0x4   : > { %p86_p0 = scmp.eq.s32.totalorder %s85_s17, 0  ;;  %p98_p1 = scmp.ne.s32.totalorder %s1168_s13, %s1164_s12 }
   0x5   : > { %p99_p2 = scmp.eq.s32.totalorder %s1245_s15, 3  ;;  %p869_p3 = scmp.ge.s32.totalorder %s1172_s14, 1 }
   0x6   : > { %s1255_s19 = scalar_select %p86_p0, %s1168_s13, %s88_s18  }
   0x7   : > { %p1257_p4 = por %p99_p2, %p98_p1  ;;  %p138_p5 = scmp.lt.s32.totalorder %s1172_s14, 5 }
   0x9   : > { %p139_p6 = pnand %p869_p3, %p138_p5 }
   0xa   : > { %v172_v0 = vld [vmem:[%s1455_s1] sm:$0xff] (!%p139_p6)  ;;  %s1265_s23 = sshll.u32 (!%p139_p6), %s1245_s15, 1  ;;  %vm177_vm0 = vcmask (!%p139_p6), 64512   ;;  %v480_v4 = vld [vmem:[%s1456_s2 + $0x8] sm:$0xff] (!%p139_p6)  ;;  %v481_v5 = vld [vmem:[%s1456_s2 + $0x10] sm:$0xff] (!%p139_p6)  ;;  %v259_v28 = vlaneseq (!%p139_p6) }
   0xb   : > { %142 = sbr.rel (%p139_p6) target bundleno = 594 (0x252), region = 32  ;;  %929 = vmatprep.subr.mxu0 (!%p139_p6), %v172_v0  ;;  %p162_p7 = scmp.lt.s32.totalorder (!%p139_p6), %s1265_s23, 7  ;;  %v479_v3 = vld [vmem:[%s1456_s2] sm:$0xff] (!%p139_p6)  ;;  %v482_v7 = vld [vmem:[%s1456_s2 + $0x18] sm:$0xff] (!%p139_p6)  ;;  %v484_v10 = vld [vmem:[%s1456_s2 + $0x28] sm:$0xff] (!%p139_p6) }
   0xc   : > { %930 = vmatpush3.msra.mxu0 (!%p139_p6), %v172_v0  ;;  %v974_v6 = vpack.c.bf16 (!%p139_p6), %v480_v4, %v479_v3  ;;  %v978_v8 = vpack.c.bf16 (!%p139_p6), %v482_v7, %v481_v5  ;;  %v483_v9 = vld [vmem:[%s1456_s2 + $0x20] sm:$0xff] (!%p139_p6)  ;;  %v173_v11 = vld [vmem:[%s1455_s1 + $0x8] sm:$0xff] (!%p139_p6)  ;;  %v485_v13 = vld [vmem:[%s1456_s2 + $0x30] sm:$0xff] (!%p139_p6)  ;;  %v260_v29 = vshrl.u32 (!%p139_p6), %v259_v28, 7  ;;  %v1206_v0 = vmov (!%p139_p6), 2102212464  }
   0xd   : > { %v982_v12 = vpack.c.bf16 (!%p139_p6), %v484_v10, %v483_v9  ;;  %934 = vmatprep.subr.mxu0 (!%p139_p6), %v173_v11  ;;  %v486_v14 = vld [vmem:[%s1456_s2 + $0x38] sm:$0xff] (!%p139_p6)  ;;  %v487_v16 = vld [vmem:[%s1456_s2 + $0x40] sm:$0xff] (!%p139_p6)  ;;  %v488_v17 = vld [vmem:[%s1456_s2 + $0x48] sm:$0xff] (!%p139_p6)  ;;  %v1208_v5 = vmov (!%p139_p6), 683565275  }
   0xe   : > { %975 = vmatprep.subr.bf16.mxu1 (!%p139_p6), %v974_v6  ;;  %v986_v15 = vpack.c.bf16 (!%p139_p6), %v486_v14, %v485_v13  ;;  %v990_v18 = vpack.c.bf16 (!%p139_p6), %v488_v17, %v487_v16  ;;  %v489_v19 = vld [vmem:[%s1456_s2 + $0x50] sm:$0xff] (!%p139_p6)  ;;  %v490_v20 = vld [vmem:[%s1456_s2 + $0x58] sm:$0xff] (!%p139_p6)  ;;  %v491_v22 = vld [vmem:[%s1456_s2 + $0x60] sm:$0xff] (!%p139_p6)  ;;  %v261_v30 = vsub.s32 (!%p139_p6), 0, %v260_v29  ;;  %v267_v32 = vsub.s32 (!%p139_p6), 1, %v260_v29 }
   0xf   : > { %977 = vmatpush3.bf16.msra.mxu1 (!%p139_p6), %v974_v6  ;;  %v994_v21 = vpack.c.bf16 (!%p139_p6), %v490_v20, %v489_v19  ;;  %v492_v23 = vld [vmem:[%s1456_s2 + $0x68] sm:$0xff] (!%p139_p6)  ;;  %v493_v25 = vld [vmem:[%s1456_s2 + $0x70] sm:$0xff] (!%p139_p6)  ;;  %v494_v26 = vld [vmem:[%s1456_s2 + $0x78] sm:$0xff] (!%p139_p6)  ;;  %v1210_v10 = vmov (!%p139_p6), 2475754826  }
  0x10   : > { %979 = vmatprep.subr.bf16.mxu1 (!%p139_p6), %v978_v8  ;;  %v998_v24 = vpack.c.bf16 (!%p139_p6), %v492_v23, %v491_v22  ;;  %v1002_v27 = vpack.c.bf16 (!%p139_p6), %v494_v26, %v493_v25  ;;  %v174_v31 = vld [vmem:[%s1455_s1 + $0x10] sm:$0x3] (!%p139_p6) }
  0x11   : > { %v262_v33 = vrot.slane (!%p139_p6), %v174_v31, %v261_v30  ;;  %v268_v34 = vrot.slane (!%p139_p6), %v174_v31, %v267_v32 }
  0x12   : > { %s163_s24 = scalar_select %p162_p7, %s1265_s23, 7 }
  0x13   : > { %981 = vmatpush3.bf16.msra.mxu1 %v978_v8  ;;  %v1209_v8 = vmov 1326507024   ;;  %s902_s29 = sshll.u32 (%p1257_p4), %s1245_s15, 4 }
  0x14   : > { %s872_s25 = sshll.u32 %s163_s24, 3  ;;  %983 = vmatprep.subr.bf16.mxu1 %v982_v12  ;;  %s1420_s4 = scalar_lea.vmem (%p1257_p4), %s1457_s3, %s902_s29  }
  0x15   : > { %s165_s28 = scalar_lea.vmem %s1454_s0, %s872_s25  ;;  %s158_s25 = sand.u32 1, %s1164_s12  }
  0x16   : > { %v175_v1 = vld [vmem:[%s165_s28] sm:$0xff]  ;;  %v176_v2 = vld [vmem:[%s165_s28 + $0x8] sm:$0xff]  ;;  %s870_s26 = sshll.u32 %s158_s25, 4  ;;  %s655_s28 = ssub.s32 (%p1257_p4), 7, %s1265_s23 }
  0x17   : > { %931 = vmatprep.mubr.msk.f32.mxu0 %vm177_vm0, %v175_v1  ;;  %985 = vmatpush3.bf16.msra.mxu1 %v982_v12  ;;  %v1211_v12 = vmov 2131351028   ;;  %s1409_s27 = scalar_lea.vmem [#allocation2], %s870_s26   ;;  %p656_p8 = scmp.lt.s32.totalorder (%p1257_p4), %s655_s28, 2 }
  0x18   : > { %932 = vmatmul.mubr.msk.f32.vlgmr.msra.gmra.mrb[0].mxu0 %vm177_vm0, %v176_v2  ;;  %987 = vmatprep.subr.bf16.mxu1 %v986_v15 }
  0x19   : > { %936 = vmatprep.mubr.msk.f32.mxu0 %vm177_vm0, %v175_v1  ;;  %935 = vmatpush3.msra.mxu0 %v173_v11 }
  0x1b   : > { %989 = vmatpush3.bf16.msra.mxu1 %v986_v15 }
  0x1c   : > { %937 = vmatmul.mubr.msk.f32.vlgmr.msra.gmra.mrb[2].mxu0 %vm177_vm0, %v176_v2  ;;  %991 = vmatprep.subr.bf16.mxu1 %v990_v18  ;;  %v1207_v2 = vmov 920167782  }
  0x1f   : > { %993 = vmatpush3.bf16.msra.mxu1 %v990_v18 }
  0x20   : > { %995 = vmatprep.subr.bf16.mxu1 %v994_v21 }
  0x23   : > { %997 = vmatpush3.bf16.msra.mxu1 %v994_v21 }
  0x24   : > { %999 = vmatprep.subr.bf16.mxu1 %v998_v24 }
  0x27   : > { %1001 = vmatpush3.bf16.msra.mxu1 %v998_v24 }
  0x28   : > { %1003 = vmatprep.subr.bf16.mxu1 %v1002_v27 }
  0x2b   : > { %1005 = vmatpush3.bf16.msra.mxu1 %v1002_v27 }
  0xeb   : > { %v933_v35 = vpop.f32.mrb[0].mxu0 }
  0xec   : > { %v264_v36 = vmul.f32 %v933_v35, %v262_v33  ;;  %v250_v37 = vpop.f32.mrb[1].mxu0 }
  0xed   : > { %v263_v38 = vmul.f32 %v262_v33, %v250_v37 }
  0xee   : > { %v1330_v39 = vadd.f32 %v268_v34, %v264_v36 }
  0xef   : > { %v1332_v40 = vadd.f32 %v268_v34, %v263_v38 }
  0xf0   : > { %v378_v41 = vand.u32 2139095040, %v1330_v39  ;;  %v375_v42 = vand.u32 2147483647, %v1330_v39 }
  0xf1   : > { %v274_v43 = vand.u32 2139095040, %v1332_v40  ;;  %v271_v44 = vand.u32 2147483647, %v1332_v40  ;;  %vm273_vm15 = vcmp.lt.s32.totalorder %v1332_v40, 0 }
  0xf2   : > { %v379_v45 = vshrl.u32 %v378_v41, 23  ;;  %v382_v47 = vand.u32 8388607, %v375_v42 }
  0xf3   : > { %v275_v46 = vshrl.u32 %v274_v43, 23  ;;  %v278_v49 = vand.u32 8388607, %v271_v44  ;;  %vm272_vm0 = vcmp.le.f32.partialorder %v271_v44, 0.7853982 }
  0xf4   : > { %v879_v48 = vadd.s32 4294967169, %v379_v45  ;;  %v383_v53 = vor.u32 8388608, %v382_v47 }
  0xf5   : > { %v875_v50 = vadd.s32 4294967169, %v275_v46  ;;  %v279_v54 = vor.u32 8388608, %v278_v49 }
  0xf6   : > { %v385_v51 = vadd.s32 1, %v879_v48  ;;  %v1344_v59 = vshll.u32 %v383_v53, 8 }
  0xf7   : > { %v281_v52 = vadd.s32 1, %v875_v50  ;;  %v1349_v63 = vshll.u32 %v279_v54, 8 }
  0xf8   : > { %vm386_vm1 = vcmp.gt.s32.totalorder %v385_v51, 0 }
  0xf9   : > { %v387_v55 = vsel %vm386_vm1, %v385_v51, 0  ;;  %vm282_vm2 = vcmp.gt.s32.totalorder %v281_v52, 0  ;;  %vm377_vm1 = vcmp.lt.s32.totalorder %v1330_v39, 0 }
  0xfa   : > { %v1342_v56 = vand.u32 31, %v387_v55  ;;  %v283_v57 = vsel %vm282_vm2, %v281_v52, 0  ;;  %v1346_v60 = vshrl.u32 %v387_v55, 5  ;;  %vm376_vm2 = vcmp.le.f32.partialorder %v375_v42, 0.7853982 }
  0xfb   : > { %v285_v58 = vand.u32 31, %v283_v57  ;;  %v284_v62 = vshrl.u32 %v283_v57, 5 }
  0xfc   : > { %v390_v61 = vsub.s32 32, %v1342_v56  ;;  %v401_v1 = vshll.u32 %v1206_v0, %v1342_v56  ;;  %v404_v3 = vshll.u32 %v1207_v2, %v1342_v56  ;;  %vm410_vm4 = vcmp.lt.s32.totalorder %v1346_v60, 4 }
  0xfd   : > { %v286_v4 = vsub.s32 32, %v285_v58  ;;  %v288_v6 = vshll.u32 %v1208_v5, %v285_v58  ;;  %v291_v11 = vshll.u32 %v1210_v10, %v285_v58  ;;  %v294_v13 = vshll.u32 %v1211_v12, %v285_v58 }
  0xfe   : > { %v402_v7 = vshrl.u32 %v1207_v2, %v390_v61  ;;  %v405_v9 = vshrl.u32 %v1209_v8, %v390_v61  ;;  %v297_v17 = vshll.u32 %v1206_v0, %v285_v58  ;;  %v300_v20 = vshll.u32 %v1207_v2, %v285_v58 }
  0xff   : > { %v289_v14 = vshrl.u32 %v1210_v10, %v286_v4  ;;  %v292_v15 = vshrl.u32 %v1211_v12, %v286_v4  ;;  %v295_v16 = vshrl.u32 %v1206_v0, %v286_v4  ;;  %v287_v18 = vshrl.u32 %v1208_v5, %v286_v4 }
 0x100   : > { %v298_v19 = vshrl.u32 %v1207_v2, %v286_v4  ;;  %v301_v21 = vshrl.u32 %v1209_v8, %v286_v4  ;;  %v403_v22 = vor.u32 %v402_v7, %v401_v1  ;;  %v406_v26 = vor.u32 %v405_v9, %v404_v3 }
 0x101   : > { %v290_v23 = vor.u32 %v289_v14, %v288_v6  ;;  %v293_v24 = vor.u32 %v292_v15, %v291_v11  ;;  %v296_v25 = vor.u32 %v295_v16, %v294_v13  ;;  %vm303_vm3 = vcmp.lt.s32.totalorder %v284_v62, 1 }
 0x102   : > { %v299_v27 = vor.u32 %v298_v19, %v297_v17  ;;  %v302_v28 = vor.u32 %v301_v21, %v300_v20  ;;  %vm305_vm5 = vcmp.lt.s32.totalorder %v284_v62, 3  ;;  %vm306_vm6 = vcmp.lt.s32.totalorder %v284_v62, 4 }
 0x103   : > { %v307_v29 = vsel %vm303_vm3, %v287_v18, %v290_v23  ;;  %v308_v30 = vsel %vm306_vm6, %v296_v25, 2102212464  ;;  %v311_v31 = vsel %vm303_vm3, %v290_v23, %v293_v24  ;;  %v315_v33 = vsel %vm303_vm3, %v293_v24, %v296_v25 }
 0x104   : > { %v312_v32 = vsel %vm306_vm6, %v299_v27, 920167782  ;;  %vm304_vm7 = vcmp.lt.s32.totalorder %v284_v62, 2  ;;  %v309_v34 = vsel %vm305_vm5, %v293_v24, %v308_v30  ;;  %v316_v36 = vsel %vm306_vm6, %v302_v28, 1326507024 }
 0x105   : > { %v313_v35 = vsel %vm305_vm5, %v296_v25, %v312_v32  ;;  %v416_v37 = vsel %vm410_vm4, %v403_v22, 920167782  ;;  %v420_v38 = vsel %vm410_vm4, %v406_v26, 1326507024  ;;  %v317_v43 = vsel %vm305_vm5, %v299_v27, %v316_v36 }
 0x106   : > { %v314_v41 = vsel %vm304_vm7, %v311_v31, %v313_v35  ;;  %v310_v45 = vsel %vm304_vm7, %v307_v29, %v309_v34  ;;  %v318_v46 = vsel %vm304_vm7, %v315_v33, %v317_v43  ;;  %v392_v51 = vshll.u32 %v1208_v5, %v1342_v56 }
 0x107   : > { %v1359_v47 = vmul.u32.u64.low %v1349_v63, %v314_v41  ;;  %v1360_v48 = vmul.u32.u64.high %v1349_v63, %v314_v41, %v1359_v47  ;;  %v1363_v49 = vmul.u32.u64.low %v1349_v63, %v318_v46  ;;  %v1364_v50 = vmul.u32.u64.high %v1349_v63, %v318_v46, %v1363_v49 }
 0x108   : > { %v393_v52 = vshrl.u32 %v1210_v10, %v390_v61  ;;  %v395_v53 = vshll.u32 %v1210_v10, %v1342_v56  ;;  %v396_v54 = vshrl.u32 %v1211_v12, %v390_v61  ;;  %v398_v55 = vshll.u32 %v1211_v12, %v1342_v56 }
 0x109   : > { %v399_v57 = vshrl.u32 %v1206_v0, %v390_v61  ;;  %v326_v58 = vmul.u32 %v1349_v63, %v310_v45  ;;  %v391_v62 = vshrl.u32 %v1208_v5, %v390_v61  ;;  %vm407_vm8 = vcmp.lt.s32.totalorder %v1346_v60, 1 }
 0x10a   : > { %v394_v1 = vor.u32 %v393_v52, %v392_v51  ;;  %v329_v2 = vadd.s32 1, %v1360_v48  ;;  %v397_v3 = vor.u32 %v396_v54, %v395_v53  ;;  %vm409_vm9 = vcmp.lt.s32.totalorder %v1346_v60, 3 }
 0x10b   : > { %v400_v4 = vor.u32 %v399_v57, %v398_v55  ;;  %vm328_vm10 = vc.u32 %v1364_v50, %v1359_v47  ;;  %vm408_vm11 = vcmp.lt.s32.totalorder %v1346_v60, 2  ;;  %v421_v0 = vsel %vm409_vm9, %v403_v22, %v420_v38 }
 0x10c   : > { %v411_v56 = vsel %vm407_vm8, %v391_v62, %v394_v1  ;;  %v330_v63 = vsel %vm328_vm10, %v329_v2, %v1360_v48  ;;  %v415_v5 = vsel %vm407_vm8, %v394_v1, %v397_v3  ;;  %v327_v34 = vadd.s32 %v1359_v47, %v1364_v50 }
 0x10d   : > { %v412_v61 = vsel %vm410_vm4, %v400_v4, 2102212464  ;;  %v417_v6 = vsel %vm409_vm9, %v400_v4, %v416_v37  ;;  %v331_v7 = vadd.s32 %v330_v63, %v326_v58  ;;  %v419_v10 = vsel %vm407_vm8, %v397_v3, %v400_v4 }
 0x10e   : > { %v413_v8 = vsel %vm409_vm9, %v397_v3, %v412_v61  ;;  %v418_v9 = vsel %vm408_vm11, %v415_v5, %v417_v6  ;;  %v422_v11 = vsel %vm408_vm11, %v419_v10, %v421_v0  ;;  %vm363_vm6 = vweird.f32 %v1332_v40 }
 0x10f   : > { %v1385_v12 = vmul.u32.u64.low %v1344_v59, %v418_v9  ;;  %v1386_v13 = vmul.u32.u64.high %v1344_v59, %v418_v9, %v1385_v12  ;;  %v332_v14 = vadd.s32 536870912, %v331_v7  ;;  %v414_v17 = vsel %vm408_vm11, %v411_v56, %v413_v8 }
 0x110   : > { %v1389_v15 = vmul.u32.u64.low %v1344_v59, %v422_v11  ;;  %v1390_v16 = vmul.u32.u64.high %v1344_v59, %v422_v11, %v1389_v15  ;;  %v430_v21 = vmul.u32 %v1344_v59, %v414_v17  ;;  %vm467_vm10 = vweird.f32 %v1330_v39 }
 0x111   : > { %v333_v18 = vshrl.u32 %v332_v14, 30  ;;  %v433_v19 = vadd.s32 1, %v1386_v13 }
 0x112   : > { %vm432_vm12 = vc.u32 %v1390_v16, %v1385_v12  ;;  %v431_v54 = vadd.s32 %v1385_v12, %v1390_v16 }
 0x113   : > { %v334_v20 = vshll.u32 %v333_v18, 30  ;;  %v434_v60 = vsel %vm432_vm12, %v433_v19, %v1386_v13  ;;  %v357_v50 = vsub.s32 4, %v333_v18 }
 0x114   : > { %v435_v23 = vadd.s32 %v434_v60, %v430_v21 }
 0x115   : > { %v335_v22 = vsub.s32 %v331_v7, %v334_v20  ;;  %v358_v0 = vsel %vm273_vm15, %v357_v50, %v333_v18 }
 0x116   : > { %v436_v25 = vadd.s32 536870912, %v435_v23  ;;  %v360_v5 = vsel %vm272_vm0, 0, %v358_v0 }
 0x117   : > { %v337_v24 = vsub.s32 0, %v335_v22  ;;  %v364_v10 = vadd.s32 3, %v360_v5 }
 0x118   : > { %v437_v27 = vshrl.u32 %v436_v25, 30 }
 0x119   : > { %v876_v26 = vmin.u32 %v337_v24, %v335_v22  ;;  %v365_v13 = vand.u32 3, %v364_v10 }
 0x11a   : > { %v438_v29 = vshll.u32 %v437_v27, 30  ;;  %v461_v9 = vsub.s32 4, %v437_v27 }
 0x11b   : > { %v339_v28 = vclz %v876_v26  ;;  %vm370_vm3 = vcmp.eq.s32.totalorder %v365_v13, 2  ;;  %vm367_vm4 = vcmp.eq.s32.totalorder %v365_v13, 0  ;;  %vm366_vm5 = vcmp.lt.s32.totalorder %v365_v13, 2 }
 0x11c   : > { %v439_v31 = vsub.s32 %v435_v23, %v438_v29  ;;  %v462_v12 = vsel %vm377_vm1, %v461_v9, %v437_v27 }
 0x11d   : > { %v877_v30 = vadd.s32 4294967294, %v339_v28  ;;  %v464_v16 = vsel %vm376_vm2, 0, %v462_v12 }
 0x11e   : > { %v441_v33 = vsub.s32 0, %v439_v31  ;;  %v468_v21 = vadd.s32 3, %v464_v16 }
 0x11f   : > { %vm878_vm13 = vcmp.lt.s32.totalorder %v877_v30, 0 }
 0x120   : > { %v342_v32 = vsel %vm878_vm13, 0, %v877_v30  ;;  %v880_v36 = vmin.u32 %v441_v33, %v439_v31  ;;  %v469_v23 = vand.u32 3, %v468_v21 }
 0x121   : > { %v343_v59 = vsub.s32 32, %v342_v32  ;;  %v347_v35 = vsub.s32 4294967266, %v342_v32  ;;  %v344_v37 = vshll.u32 %v335_v22, %v342_v32 }
 0x122   : > { %v443_v43 = vclz %v880_v36  ;;  %vm474_vm7 = vcmp.eq.s32.totalorder %v469_v23, 2  ;;  %vm471_vm8 = vcmp.eq.s32.totalorder %v469_v23, 0  ;;  %vm470_vm9 = vcmp.lt.s32.totalorder %v469_v23, 2 }
 0x123   : > { %v345_v38 = vshrl.u32 %v327_v34, %v343_v59  ;;  %v348_v41 = vadd.s32 127, %v347_v35 }
 0x124   : > { %v881_v48 = vadd.s32 4294967294, %v443_v43 }
 0x125   : > { %v346_v45 = vor.u32 %v345_v38, %v344_v37  ;;  %v349_v46 = vshll.u32 %v348_v41, 23 }
 0x126   : > { %vm882_vm14 = vcmp.lt.s32.totalorder %v881_v48, 0 }
 0x127   : > { %v350_v49 = vor.u32 4788187, %v349_v46  ;;  %v353_v52 = vcvt.s32.f32 %v346_v45  ;;  %v446_v53 = vsel %vm882_vm14, 0, %v881_v48 }
 0x128   : > { %v447_v55 = vsub.s32 32, %v446_v53  ;;  %v451_v57 = vsub.s32 4294967266, %v446_v53  ;;  %v448_v58 = vshll.u32 %v439_v31, %v446_v53 }
 0x129   : > { %v351_v51 = vand.u32 2147483647, %v350_v49 }
 0x12a   : > { %v449_v62 = vshrl.u32 %v431_v54, %v447_v55  ;;  %v452_v1 = vadd.s32 127, %v451_v57 }
 0x12b   : > { %v354_v47 = vmul.f32 %v353_v52, %v351_v51 }
 0x12c   : > { %v450_v3 = vor.u32 %v449_v62, %v448_v58  ;;  %v453_v4 = vshll.u32 %v452_v1, 23 }
 0x12d   : > { %v355_v2 = vxor.u32 2147483648, %v354_v47 }
 0x12e   : > { %v454_v61 = vor.u32 4788187, %v453_v4  ;;  %v457_v7 = vcvt.s32.f32 %v450_v3 }
 0x12f   : > { %v356_v56 = vsel %vm273_vm15, %v355_v2, %v354_v47 }
 0x130   : > { %v359_v63 = vsel %vm272_vm0, %v1332_v40, %v356_v56  ;;  %v455_v6 = vand.u32 2147483647, %v454_v61  ;;  %v938_v40 = vpop.f32.mrb[2].mxu0 }
 0x131   : > { %1110 = vcosq.f32 %v359_v63  ;;  %v561_v32 = vpop.f32.mrb[3].mxu0 }
 0x132   : > { %1112 = vsinq.f32 %v359_v63  ;;  %v458_v8 = vmul.f32 %v457_v7, %v455_v6 }
 0x134   : > { %v459_v11 = vxor.u32 2147483648, %v458_v8 }
 0x136   : > { %v460_v44 = vsel %vm377_vm1, %v459_v11, %v458_v8 }
 0x137   : > { %v463_v14 = vsel %vm376_vm2, %v1330_v39, %v460_v44 }
 0x138   : > { %1114 = vcosq.f32 %v463_v14 }
 0x139   : > { %1116 = vsinq.f32 %v463_v14 }
 0x13b   : > { %v1111_v15 = vpop.eup %1110 }
 0x13c   : > { %v1113_v17 = vpop.eup %1112  ;;  %v371_v18 = vxor.u32 2147483648, %v1111_v15 }
 0x13d   : > { %v368_v19 = vxor.u32 2147483648, %v1113_v17 }
 0x13e   : > { %v372_v20 = vsel %vm370_vm3, %v371_v18, %v1113_v17 }
 0x13f   : > { %v369_v60 = vsel %vm367_vm4, %v1111_v15, %v368_v19 }
 0x140   : > { %v373_v42 = vsel %vm366_vm5, %v369_v60, %v372_v20 }
 0x141   : > { %v374_v22 = vsel %vm363_vm6, nan, %v373_v42 }
 0x142   : > { %971 = vmatprep.mubr.f32.mxu1 %v374_v22  ;;  %v1115_v24 = vpop.eup %1114 }
 0x143   : > { %v1117_v25 = vpop.eup %1116  ;;  %v475_v26 = vxor.u32 2147483648, %v1115_v24 }
 0x144   : > { %v472_v27 = vxor.u32 2147483648, %v1117_v25 }
 0x145   : > { %v476_v28 = vsel %vm474_vm7, %v475_v26, %v1117_v25 }
 0x146   : > { %v473_v29 = vsel %vm471_vm8, %v1115_v24, %v472_v27 }
 0x147   : > { %v477_v30 = vsel %vm470_vm9, %v473_v29, %v476_v28 }
 0x148   : > { %v478_v31 = vsel %vm467_vm10, nan, %v477_v30 }
 0x149   : > { %972 = vmatmul.mubr.f32.vlgmr.msra.gmra.mrb[0].mxu1 %v478_v31 }
 0x21a   : > { %653 = sbr.rel (!%p1257_p4) target bundleno = 594 (0x252), region = 36 }
 0x21c   : > { %v973_v33 = vpop.f32.mrb[0].mxu1 }
 0x21d   : > { %v642_v34 = vadd.f32 %v973_v33, %v938_v40  ;;  %v636_v59 = vpop.f32.mrb[1].mxu1 }
 0x21e   : > { %v637_v35 = vadd.f32 %v636_v59, %v561_v32 }
 0x21f   : > { %646 = vst [vmem:[%s1409_s27 + $0x8] sm:$0xff] %v642_v34 }
 0x220   : > { %645 = vst [vmem:[%s1409_s27] sm:$0xff] %v637_v35 }
 0x221   : > { %s1463_s28 = smov (!%p656_p8, %s655_s28), 2 }
 0x222   : > { %s887_s5 = sshll.u32 %s1463_s28, 7 }
 0x223   : > { %p890_p9 = scmp.eq.s32.totalorder %s887_s5, 0 }
 0x224   : > { %s1426_s6 = sshrl.u32 (!%p890_p9), %s1463_s28, 1 }
 0x225   : > { %664 = sbr.rel (%p890_p9) target bundleno = 594 (0x252), region = 40  ;;  %p891_p10 = scmp.le.s32.totalorder (!%p890_p9), %s1426_s6, 0 }
 0x22c   : > { %822 = sbr.rel (%p891_p10) target bundleno = 573 (0x23d), region = 116  ;;  %s1174_s15 = smov (!%p891_p10), %s1420_s4  }
 0x22d   : > { %s1178_s20 = smov (!%p891_p10), %s1409_s27   ;;  %s1182_s23 = smov (!%p891_p10), 0  }
 0x22e   : > { %s1186_s7 = smov (!%p891_p10), 0  }
 0x233 LB: >> { %v728_v39 = vld [vmem:[%s1180_s20] sm:$0xff]  ;;  %v730_v36 = vld [vmem:[%s1180_s20 + $0x8] sm:$0xff]  ;;  %s732_s8 = sadd.s32 1, %s1184_s23  ;;  %s722_s7 = sadd.s32 1, %s1188_s7   ;;  %s1188_s7 = sphi %s1186_s7, %s722_s7   ;;  %s1184_s23 = sphi %s1182_s23, %s1183_s23   ;;  %s1180_s20 = sphi %s1178_s20, %s737_s20   ;;  %s1176_s15 = sphi %s1174_s15, %s738_s15  }
 0x234   : >> { %729 = vst [vmem:[%s1176_s15] sm:$0xff] %v728_v39  ;;  %731 = vst [vmem:[%s1176_s15 + $0x8] sm:$0xff] %v730_v36  ;;  %p733_p11 = scmp.ge.s32.totalorder %s732_s8, %s1426_s6  ;;  %p721_p12 = scmp.ge.s32.totalorder %s722_s7, %s1426_s6 }
 0x236   : >> { %s1465_s8 = smov (%p733_p11, %s732_s8), 0  ;;  %724 = sbr.rel (!%p721_p12) target bundleno = 563 (0x233), region = 122 }
 0x237   : >> { %s892_s9 = sshll.u32 %s1465_s8, 4  ;;  %s1183_s23 = smov %s1465_s8  }
 0x238   : >> { %s737_s20 = scalar_lea.vmem %s1409_s27, %s892_s9 [#allocation2]   ;;  %s738_s15 = scalar_lea.vmem %s1420_s4, %s892_s9  }
 0x23d PF: > { %s1436_s10 = sand.u32 1, %s1463_s28   ;;  %s903_s11 = sshll.u32 %s1426_s6, 4 }
 0x23e   : > { %s743_s14 = scalar_lea.vmem %s1409_s27, %s903_s11 [#allocation2]   ;;  %s745_s17 = scalar_lea.vmem %s1420_s4, %s903_s11  }
 0x23f   : > { %p897_p13 = scmp.le.s32.totalorder %s1436_s10, 0 }
 0x240   : > { %s1190_s18 = smov (!%p897_p13), %s745_s17   ;;  %s1194_s21 = smov (!%p897_p13), %s743_s14  }
 0x241   : > { %836 = sbr.rel (%p897_p13) target bundleno = 594 (0x252), region = 127  ;;  %s1198_s22 = smov (!%p897_p13), 0  }
 0x242   : > { %s1202_s24 = smov (!%p897_p13), 0  }
 0x248 LB: >> { %v755_v37 = vld [vmem:[%s1196_s21] sm:$0xff]  ;;  %s757_s25 = sadd.s32 1, %s1200_s22  ;;  %s749_s24 = sadd.s32 1, %s1204_s24   ;;  %s1204_s24 = sphi %s1202_s24, %s749_s24   ;;  %s1200_s22 = sphi %s1198_s22, %s1199_s22   ;;  %s1196_s21 = sphi %s1194_s21, %s762_s21   ;;  %s1192_s18 = sphi %s1190_s18, %s763_s18  }
 0x249   : >> { %756 = vst [vmem:[%s1192_s18] sm:$0xff] %v755_v37  ;;  %p758_p0 = scmp.ge.s32.totalorder %s757_s25, %s1436_s10  ;;  %p748_p1 = scmp.ge.s32.totalorder %s749_s24, %s1436_s10 }
 0x24b   : >> { %s1467_s25 = smov (%p758_p0, %s757_s25), 0  ;;  %751 = sbr.rel (!%p748_p1) target bundleno = 584 (0x248), region = 133 }
 0x24c   : >> { %s898_s26 = sshll.u32 %s1467_s25, 3  ;;  %s1199_s22 = smov %s1467_s25  }
 0x24d   : >> { %s762_s21 = scalar_lea.vmem %s743_s14, %s898_s26 [#allocation2]   ;;  %s763_s18 = scalar_lea.vmem %s745_s17, %s898_s26  }
 0x252 PF: > { %p10_p2 = scmp.ge.s32.totalorder %s1247_s16, 6   ;;  %s1459_s12 = smov %s1168_s13 }
 0x253   : > { %s1460_s13 = smov %s1255_s19  ;;  %s1461_s14 = smov %s1247_s16 }
 0x254   :  { %12 = sbr.rel (!%p10_p2) target bundleno = 2 (0x2), region = 144 }

</bundles_post_ra>
